<compile_context>
chip_gen: v6e
topology: v6e:2x2x1
jax: 0.10.0
libtpu: 0.0.40
codegen_flags: <defaults>
</compile_context>

<pallas_src>
import functools

import jax
import jax.numpy as jnp
from jax.experimental import pallas as pl
from jax.experimental.pallas import tpu as pltpu


def _layernorm_kernel(x_ref, w_ref, b_ref, o_ref, *, eps):
    # x_ref/o_ref: (1, C, tl) block — channels on sublanes, spatial on lanes.
    # w_ref/b_ref: (C, 1), already f32, resident across the grid.
    x = x_ref[...].astype(jnp.float32)
    mean = jnp.mean(x, axis=1, keepdims=True)                 # (1, 1, tl)
    xm = x - mean                                             # reused below
    var = jnp.mean(xm * xm, axis=1, keepdims=True)            # population var
    denom = jnp.sqrt(var) + eps                               # eps added to std (module spec)
    inv = pl.reciprocal(denom, approx=True)                   # EUP slot
    inv = inv * (2.0 - denom * inv)                           # one Newton step -> ~f32 accurate
    y = xm * (inv * w_ref[...]) + b_ref[...]
    o_ref[...] = y.astype(o_ref.dtype)


def uniformer_layernorm(x, weight, bias, *, eps=1e-5,
                        target_block_bytes=2 * 1024 * 1024):
    """x: (N, C, T, H, W); weight/bias: (1, C, 1, 1, 1). Returns (N, C, T, H, W)."""
    N, C, T, H, W = x.shape
    L = T * H * W

    x_ncl = x.reshape(N, C, L)                     # free reshape, no transpose
    w = weight.reshape(C, 1).astype(jnp.float32)   # hoisted f32 cast (tiny, resident)
    b = bias.reshape(C, 1).astype(jnp.float32)

    # Lane tile: ~target_block_bytes per block, multiple of 128 lanes.  If the
    # whole spatial extent fits in one tile, use tl = L exactly (block == full
    # dim -> no masking needed, works for any ragged L).  Otherwise use the
    # 128-aligned tile and let Pallas mask the partial final block.
    itemsize = jnp.dtype(x.dtype).itemsize
    tl = max(128, (target_block_bytes // (C * itemsize)) // 128 * 128)
    if L <= tl:
        tl = L
    grid = (N, pl.cdiv(L, tl))

    out = pl.pallas_call(
        functools.partial(_layernorm_kernel, eps=eps),
        out_shape=jax.ShapeDtypeStruct((N, C, L), x.dtype),
        grid_spec=pltpu.PrefetchScalarGridSpec(
            num_scalar_prefetch=0,
            grid=grid,
            in_specs=[
                pl.BlockSpec((1, C, tl), lambda n, l: (n, 0, l)),
                pl.BlockSpec((C, 1), lambda n, l: (0, 0)),
                pl.BlockSpec((C, 1), lambda n, l: (0, 0)),
            ],
            out_specs=pl.BlockSpec((1, C, tl), lambda n, l: (n, 0, l)),
        ),
        compiler_params=pltpu.CompilerParams(
            dimension_semantics=("parallel", "parallel"),
            vmem_limit_bytes=32 * 1024 * 1024,
        ),
    )(x_ncl, w, b)

    return out.reshape(N, C, T, H, W)


def _reference(x, weight, bias, eps=1e-5):
    x32 = x.astype(jnp.float32)
    mean = jnp.mean(x32, axis=1, keepdims=True)
    var = jnp.mean((x32 - mean) ** 2, axis=1, keepdims=True)
    std = jnp.sqrt(var)
    return ((x32 - mean) / (std + eps) * weight.astype(jnp.float32)
            + bias.astype(jnp.float32)).astype(x.dtype)


if __name__ == "__main__":
    key = jax.random.PRNGKey(0)
    kx, kw, kb, kx2, kx3 = jax.random.split(key, 5)

    # Case 1: lane count (T*H*W = 256) is a multiple of 128, single tile.
    N, C, T, H, W = 2, 64, 4, 8, 8
    x = jax.random.normal(kx, (N, C, T, H, W), dtype=jnp.float32)
    weight = 1.0 + 0.1 * jax.random.normal(kw, (1, C, 1, 1, 1), dtype=jnp.float32)
    bias = 0.1 * jax.random.normal(kb, (1, C, 1, 1, 1), dtype=jnp.float32)

    out = jax.block_until_ready(uniformer_layernorm(x, weight, bias, eps=1e-5))
    ref = _reference(x, weight, bias, eps=1e-5)
    assert out.shape == x.shape and out.dtype == x.dtype
    assert jnp.allclose(out, ref, atol=1e-4, rtol=1e-4)

    # Case 2: ragged lane count (T*H*W = 105 < 128) -> tl == L (full-dim block).
    N2, C2, T2, H2, W2 = 1, 32, 3, 7, 5
    x2 = jax.random.normal(kx2, (N2, C2, T2, H2, W2), dtype=jnp.float32)
    w2 = jnp.ones((1, C2, 1, 1, 1), jnp.float32)
    b2 = jnp.zeros((1, C2, 1, 1, 1), jnp.float32)
    out2 = jax.block_until_ready(uniformer_layernorm(x2, w2, b2, eps=1e-5))
    ref2 = _reference(x2, w2, b2, eps=1e-5)
    assert out2.shape == x2.shape
    assert jnp.allclose(out2, ref2, atol=1e-4, rtol=1e-4)

    # Case 3: ragged lane count with multiple tiles (T*H*W = 400, tl forced to
    # 256) -> exercises the masked partial-final-block path (no host pad/slice).
    N3, C3, T3, H3, W3 = 1, 64, 4, 10, 10
    x3 = jax.random.normal(kx3, (N3, C3, T3, H3, W3), dtype=jnp.float32)
    w3 = 1.0 + 0.05 * jnp.arange(C3, dtype=jnp.float32).reshape(1, C3, 1, 1, 1)
    b3 = 0.01 * jnp.arange(C3, dtype=jnp.float32).reshape(1, C3, 1, 1, 1)
    out3 = jax.block_until_ready(
        uniformer_layernorm(x3, w3, b3, eps=1e-5, target_block_bytes=64 * 1024))
    ref3 = _reference(x3, w3, b3, eps=1e-5)
    assert out3.shape == x3.shape
    assert jnp.allclose(out3, ref3, atol=1e-4, rtol=1e-4)

    print("KERNEL_OK")
</pallas_src>

<mosaic_0001>
module attributes {stable_mosaic.version = 11 : i64} {
  func.func @_layernorm_kernel(%arg0: i32, %arg1: i32, %arg2: memref<1x64x256xf32, #tpu.memory_space<vmem>>, %arg3: memref<64x1xf32, #tpu.memory_space<vmem>>, %arg4: memref<64x1xf32, #tpu.memory_space<vmem>>, %arg5: memref<1x64x256xf32, #tpu.memory_space<vmem>>) attributes {dimension_semantics = [#tpu.dimension_semantics<parallel>, #tpu.dimension_semantics<parallel>], iteration_bounds = array<i64: 2, 1>, scalar_prefetch = 0 : i64, scratch_operands = 0 : i64, tpu.core_type = #tpu.core_type<tc>, window_params = [{transform_indices = @transform_0, window_bounds = array<i64: 1, 64, 256>}, {pipeline_mode = #tpu.pipeline_mode<synchronous>, transform_indices = @transform_1, window_bounds = array<i64: 64, 1>}, {pipeline_mode = #tpu.pipeline_mode<synchronous>, transform_indices = @transform_2, window_bounds = array<i64: 64, 1>}, {transform_indices = @transform_3, window_bounds = array<i64: 1, 64, 256>}]} {
    %c0 = arith.constant 0 : index
    %c0_0 = arith.constant 0 : index
    %c0_1 = arith.constant 0 : index
    %0 = vector.load %arg2[%c0, %c0_0, %c0_1] : memref<1x64x256xf32, #tpu.memory_space<vmem>>, vector<1x64x256xf32>
    %cst = arith.constant dense<0.000000e+00> : vector<1x256xf32>
    %1 = vector.multi_reduction <add>, %0, %cst [1] : vector<1x64x256xf32> to vector<1x256xf32>
    %2 = vector.shape_cast %1 : vector<1x256xf32> to vector<1x1x256xf32>
    %cst_2 = arith.constant 6.400000e+01 : f32
    %3 = vector.broadcast %cst_2 : f32 to vector<1x1x256xf32>
    %4 = arith.divf %2, %3 : vector<1x1x256xf32>
    %5 = vector.broadcast %4 : vector<1x1x256xf32> to vector<1x64x256xf32>
    %6 = arith.subf %0, %5 : vector<1x64x256xf32>
    %7 = arith.mulf %6, %6 : vector<1x64x256xf32>
    %cst_3 = arith.constant dense<0.000000e+00> : vector<1x256xf32>
    %8 = vector.multi_reduction <add>, %7, %cst_3 [1] : vector<1x64x256xf32> to vector<1x256xf32>
    %9 = vector.shape_cast %8 : vector<1x256xf32> to vector<1x1x256xf32>
    %cst_4 = arith.constant 6.400000e+01 : f32
    %10 = vector.broadcast %cst_4 : f32 to vector<1x1x256xf32>
    %11 = arith.divf %9, %10 : vector<1x1x256xf32>
    %12 = math.sqrt %11 : vector<1x1x256xf32>
    %cst_5 = arith.constant 9.99999974E-6 : f32
    %13 = vector.broadcast %cst_5 : f32 to vector<1x1x256xf32>
    %14 = arith.addf %12, %13 : vector<1x1x256xf32>
    %15 = tpu.reciprocal %14 {approx = true} : vector<1x1x256xf32> -> vector<1x1x256xf32>
    %16 = arith.mulf %14, %15 : vector<1x1x256xf32>
    %cst_6 = arith.constant 2.000000e+00 : f32
    %17 = vector.broadcast %cst_6 : f32 to vector<1x1x256xf32>
    %18 = arith.subf %17, %16 : vector<1x1x256xf32>
    %19 = arith.mulf %15, %18 : vector<1x1x256xf32>
    %c0_7 = arith.constant 0 : index
    %c0_8 = arith.constant 0 : index
    %20 = vector.load %arg3[%c0_7, %c0_8] : memref<64x1xf32, #tpu.memory_space<vmem>>, vector<64x1xf32>
    %21 = vector.shape_cast %20 : vector<64x1xf32> to vector<1x64x1xf32>
    %22 = vector.broadcast %19 : vector<1x1x256xf32> to vector<1x64x256xf32>
    %23 = vector.broadcast %21 : vector<1x64x1xf32> to vector<1x64x256xf32>
    %24 = arith.mulf %22, %23 : vector<1x64x256xf32>
    %25 = arith.mulf %6, %24 : vector<1x64x256xf32>
    %c0_9 = arith.constant 0 : index
    %c0_10 = arith.constant 0 : index
    %26 = vector.load %arg4[%c0_9, %c0_10] : memref<64x1xf32, #tpu.memory_space<vmem>>, vector<64x1xf32>
    %27 = vector.shape_cast %26 : vector<64x1xf32> to vector<1x64x1xf32>
    %28 = vector.broadcast %27 : vector<1x64x1xf32> to vector<1x64x256xf32>
    %29 = arith.addf %25, %28 : vector<1x64x256xf32>
    %c0_11 = arith.constant 0 : index
    %c0_12 = arith.constant 0 : index
    %c0_13 = arith.constant 0 : index
    %30 = vector.load %arg5[%c0_11, %c0_12, %c0_13] : memref<1x64x256xf32, #tpu.memory_space<vmem>>, vector<1x64x256xf32>
    tpu.vector_store %arg5[%c0_11, %c0_12, %c0_13], %29 {strides = array<i32>} : memref<1x64x256xf32, #tpu.memory_space<vmem>>, vector<1x64x256xf32>,
    return
  }
  func.func @transform_0(%arg0: i32, %arg1: i32) -> (i32, i32, i32) {
    %c0_i32 = arith.constant 0 : i32
    %c0_i32_0 = arith.constant 0 : i32
    return %arg0, %c0_i32, %arg1 : i32, i32, i32
  }
  func.func @transform_1(%arg0: i32, %arg1: i32) -> (i32, i32) {
    %c0_i32 = arith.constant 0 : i32
    %c0_i32_0 = arith.constant 0 : i32
    %c0_i32_1 = arith.constant 0 : i32
    return %c0_i32, %c0_i32_0 : i32, i32
  }
  func.func @transform_2(%arg0: i32, %arg1: i32) -> (i32, i32) {
    %c0_i32 = arith.constant 0 : i32
    %c0_i32_0 = arith.constant 0 : i32
    %c0_i32_1 = arith.constant 0 : i32
    return %c0_i32, %c0_i32_0 : i32, i32
  }
  func.func @transform_3(%arg0: i32, %arg1: i32) -> (i32, i32, i32) {
    %c0_i32 = arith.constant 0 : i32
    %c0_i32_0 = arith.constant 0 : i32
    return %arg0, %c0_i32, %arg1 : i32, i32, i32
  }
}

</mosaic_0001>

<bundles_post_ra>
// kernel: tpu_custom_call.1
= control target key start
LH: loop header
LB: loop body
LE: loop exit
PB: predicated region body
PF: predicated region fallthrough
CT: control target
= control target key end

     0   :  { %8 = vsyncpa [#allocation3], 0  ;;  %s1179_s0 = inlined_call_operand.hbm [shape: f32[2,64,256], index: 0, kind: input, shape index: {}]   ;;  %s1180_s1 = inlined_call_operand.vmem [shape: f32[64,1], index: 1, kind: input, shape index: {}]   ;;  %s1181_s2 = inlined_call_operand.vmem [shape: f32[64,1], index: 2, kind: input, shape index: {}]   ;;  %s1182_s3 = inlined_call_operand.hbm [shape: f32[2,64,256], index: 3, kind: output, shape index: {}]  }
   0x1   :  { %10 = vsyncpa [#allocation3 + $0x1], 0 }
   0x2   :  { %11 = vsyncpa [#allocation4], 0 }
   0x3   :  { %13 = vsyncpa [#allocation4 + $0x1], 0  ;;  %s832_s12 = smov 0   ;;  %s834_s13 = smov 0  }
   0x4   :  { %s836_s14 = smov 0   ;;  %s838_s15 = smov 0  }
   0x5   :  { %s840_s16 = smov 0   ;;  %s842_s17 = smov 0  }
   0x6 LB: > { %s601_s18 = sadd.s32 4294967295, %s803_s17   ;;  %s602_s19 = sadd.s32 4294967294, %s803_s17   ;;  %s803_s17 = sphi %s842_s17, %s19_s17   ;;  %s799_s16 = sphi %s840_s16, %s1193_s16   ;;  %s795_s15 = sphi %s838_s15, %s1192_s15   ;;  %s791_s14 = sphi %s836_s14, %s1191_s14   ;;  %s787_s13 = sphi %s834_s13, %s1190_s13   ;;  %s783_s12 = sphi %s832_s12, %s1189_s12  }
   0x7   : > { %s31_s20 = sadd.s32 1, %s799_s16  ;;  %s40_s21 = sadd.s32 1, %s791_s14 }
   0x8   : > { %p33_p0 = scmp.ge.s32.totalorder %s31_s20, 2  ;;  %p47_p1 = scmp.ne.s32.totalorder %s791_s14, %s787_s13 }
   0x9   : > { %p48_p2 = scmp.eq.s32.totalorder %s803_s17, 0  ;;  %p53_p3 = scmp.ne.s32.totalorder %s787_s13, %s783_s12 }
   0xa   : > { %s1195_s20 = smov (%p33_p0, %s31_s20), 0  ;;  %p54_p5 = scmp.eq.s32.totalorder %s601_s18, 0 }
   0xb   : > { %p873_p4 = por %p48_p2, %p47_p1  ;;  %s35_s23 = ssub.s32 %s799_s16, %s1195_s20 }
   0xc   : > { %p121_p6 = scmp.eq.s32.totalorder %s601_s18, 1  ;;  %p38_p7 = scmp.eq.s32.totalorder %s35_s23, 0 }
   0xd   : > { %p879_p8 = por %p54_p5, %p53_p3  ;;  %p127_p10 = scmp.eq.s32.totalorder %s602_s19, 1 }
   0xe   : > { %p883_p9 = por %p121_p6, %p47_p1  ;;  %p630_p13 = scmp.lt.s32.totalorder %s803_s17, 2 }
   0xf   : > { %s888_s26 = scalar_select %p38_p7, %s791_s14, %s40_s21  }
  0x10   : > { %p890_p11 = por %p127_p10, %p53_p3  ;;  %s153_s28 = sand.u32 1, %s791_s14  }
  0x11   : > { %s605_s29 = sshll.u32 %s153_s28, 7  ;;  %s616_s30 = sshll.u32 %s799_s16, 11 }
  0x12   : > { %s165_s6 = scalar_lea.hbm %s1179_s0, %s616_s30  ;;  %s157_s7 = scalar_lea.vmem [#allocation2], %s605_s29 }
  0x13   : > { %s166_s8 = sshll.u32 %s157_s7, 4  ;;  %p903_p0 = pnand %p630_p13, %p873_p4  ;;  %s167_s8 = int_to_ptr.vmem [resolvable:$true] %s166_s8 }
  0x14   : > { %p608_p1 = scmp.ge.s32.totalorder %s803_s17, 1  ;;  %s154_s10 = scalar_lea.sflag [#allocation3], %s153_s28 }
  0x15   : > { %p697_p2 = pneg %p903_p0  ;;  %s708_s11 = scalar_lea.vmem %s167_s8, 2048 }
  0x16   : > { %p709_p3 = scmp.ne.s32.totalorder %s167_s8, %s708_s11  ;;  %s805_s18 = smov [#allocation2]  }
  0x17   : > { %s713_s19 = sshll.u32 %s805_s18, 4  ;;  %s714_s19 = int_to_ptr.vmem [resolvable:$false] %s713_s19 }
  0x18   : > { %p711_p5 = pnand %p709_p3, %p697_p2  ;;  %s715_s21 = scalar_lea.vmem %s714_s19, 4096 }
  0x19   : > { %p716_p7 = scmp.lt.s32.totalorder %s167_s8, %s714_s19  ;;  %p717_p10 = scmp.lt.s32.totalorder %s715_s21, %s708_s11 }
  0x1a   : > { %p712_p6 = pneg %p711_p5 }
  0x1b   : > { %p718_p12 = por %p717_p10, %p716_p7 }
  0x1d   : > { %p719_p4 = pnand %p718_p12, %p712_p6 }
  0x1f   : > { %722 = shalt.err (!%p719_p4)
}
  0x20   : > { %s806_s22 = smov 256   ;;  %s807_s23 = smov 16  }
  0x21   : > { %625 = dma.hbm_to_vmem [thread:$0]  (!%p903_p0), %s165_s6, 2048, %s167_s8, %s154_s10, %s806_s22, %s806_s22, %s807_s23  }
  0x22   : > { %p174_p13 = scmp.lt.s32.totalorder %s803_s17, 3 }
  0x24   : > { %p175_p2 = pnand %p608_p1, %p174_p13 }
  0x25   : > { %s916_s28 = sand.u32 (!%p175_p2), 1, %s787_s13  }
  0x26   : > { %178 = sbr.rel (%p175_p2) target bundleno = 215 (0xd7), region = 32  ;;  %s609_s29 = sshll.u32 (!%p175_p2), %s916_s28, 7 }
  0x27   : > { %s181_s30 = scalar_lea.sflag (!%p175_p2), [#allocation3], %s916_s28  ;;  %s922_s4 = scalar_lea.vmem (!%p175_p2), [#allocation2], %s609_s29 }
  0x2b   : > { %774 = dma.done.wait (%p879_p8), %s181_s30, 2048  }
  0x2c   : > { %776 = vsyncadd (%p879_p8), %s181_s30, 4294965248  ;;  %v808_v0 = vmov 0   ;;  %v340_v1 = vld [vmem:[%s1180_s1 + $0x10] sm:$0xff]  ;;  %v338_v2 = vld [vmem:[%s1180_s1] sm:$0xff]  ;;  %s1094_s8 = scalar_lea.vmem [#allocation5], %s609_s29  ;;  %s617_s29 = sshll.u32 %s795_s15, 11 }
  0x2d   : > { %686 = vset.pattern.permute.xlu1 %v808_v0  ;;  %685 = vset.pattern.permute.xlu0 %v808_v0  ;;  %v341_v3 = vld [vmem:[%s1180_s1 + $0x18] sm:$0xff]  ;;  %v339_v4 = vld [vmem:[%s1180_s1 + $0x8] sm:$0xff]  ;;  %v342_v6 = vld [vmem:[%s1180_s1 + $0x20] sm:$0xff]  ;;  %s514_s24 = sshll.u32 %s1094_s8, 4  ;;  %s1125_s10 = scalar_lea.hbm %s1182_s3, %s617_s29  ;;  %s1127_s24 = int_to_ptr.vmem [resolvable:$true] %s514_s24 }
  0x2e   : > { %358 = vperm.xlu1 %686, %v340_v1   ;;  %348 = vperm.xlu0 %685, %v338_v2   ;;  %v343_v5 = vld [vmem:[%s1180_s1 + $0x28] sm:$0xff]  ;;  %v947_v7 = vld [vmem:[%s922_s4] sm:$0xff]  ;;  %v953_v9 = vld [vmem:[%s922_s4 + $0x10] sm:$0xff]  ;;  %s499_s11 = scalar_lea.sflag [#allocation4], %s916_s28  ;;  %s723_s18 = scalar_lea.vmem %s1127_s24, 2048 }
  0x2f   : > { %v950_v8 = vld [vmem:[%s922_s4 + $0x8] sm:$0xff]  ;;  %v956_v10 = vld [vmem:[%s922_s4 + $0x18] sm:$0xff]  ;;  %v959_v11 = vld [vmem:[%s922_s4 + $0x20] sm:$0xff]  ;;  %v225_v13 = vadd.f32 %v953_v9, %v947_v7  ;;  %p724_p8 = scmp.ne.s32.totalorder %s1127_s24, %s723_s18  ;;  %s809_s19 = smov [#allocation5]  }
  0x30   : > { %v962_v12 = vld [vmem:[%s922_s4 + $0x28] sm:$0xff]  ;;  %v238_v14 = vadd.f32 %v956_v10, %v950_v8  ;;  %v969_v15 = vld [vmem:[%s922_s4 + $0x30] sm:$0xff]  ;;  %v972_v16 = vld [vmem:[%s922_s4 + $0x38] sm:$0xff]  ;;  %s727_s21 = sshll.u32 %s809_s19, 4  ;;  %s728_s21 = int_to_ptr.vmem [resolvable:$false] %s727_s21 }
  0x31   : > { %v345_v17 = vld [vmem:[%s1180_s1 + $0x38] sm:$0xff]  ;;  %v226_v18 = vadd.f32 %v225_v13, %v959_v11  ;;  %v344_v20 = vld [vmem:[%s1180_s1 + $0x30] sm:$0xff]  ;;  %v217_v21 = vld [vmem:[%s922_s4 + $0x40] sm:$0xff]  ;;  %p725_p12 = pnand %p724_p8, %p883_p9  ;;  %p730_p1 = scmp.lt.s32.totalorder %s1127_s24, %s728_s21 }
  0x32   : > { %363 = vperm.xlu1 %686, %v341_v3   ;;  %353 = vperm.xlu0 %685, %v339_v4   ;;  %v239_v19 = vadd.f32 %v238_v14, %v962_v12  ;;  %v218_v22 = vld [vmem:[%s922_s4 + $0x48] sm:$0xff]  ;;  %v219_v25 = vld [vmem:[%s922_s4 + $0x50] sm:$0xff]  ;;  %v220_v26 = vld [vmem:[%s922_s4 + $0x58] sm:$0xff] }
  0x33   : > { %v227_v23 = vadd.f32 %v226_v18, %v969_v15  ;;  %v419_v27 = vld [vmem:[%s1181_s2 + $0x8] sm:$0xff]  ;;  %v418_v30 = vld [vmem:[%s1181_s2] sm:$0xff]  ;;  %v223_v35 = vld [vmem:[%s922_s4 + $0x70] sm:$0xff]  ;;  %p726_p0 = pneg %p725_p12 }
  0x34   : > { %v240_v24 = vadd.f32 %v239_v19, %v972_v16  ;;  %v221_v31 = vld [vmem:[%s922_s4 + $0x60] sm:$0xff]  ;;  %v222_v32 = vld [vmem:[%s922_s4 + $0x68] sm:$0xff]  ;;  %v224_v36 = vld [vmem:[%s922_s4 + $0x78] sm:$0xff]  ;;  %s729_s4 = scalar_lea.vmem %s728_s21, 4096 }
  0x35   : > { %v228_v28 = vadd.f32 %v227_v23, %v217_v21  ;;  %v421_v39 = vld [vmem:[%s1181_s2 + $0x18] sm:$0xff]  ;;  %v420_v40 = vld [vmem:[%s1181_s2 + $0x10] sm:$0xff]  ;;  %v423_v45 = vld [vmem:[%s1181_s2 + $0x28] sm:$0xff]  ;;  %p731_p3 = scmp.lt.s32.totalorder %s729_s4, %s723_s18 }
  0x36   : > { %373 = vperm.xlu1 %686, %v343_v5   ;;  %368 = vperm.xlu0 %685, %v342_v6   ;;  %v241_v29 = vadd.f32 %v240_v24, %v218_v22  ;;  %v422_v46 = vld [vmem:[%s1181_s2 + $0x20] sm:$0xff]  ;;  %v425_v51 = vld [vmem:[%s1181_s2 + $0x38] sm:$0xff]  ;;  %v424_v52 = vld [vmem:[%s1181_s2 + $0x30] sm:$0xff] }
  0x37   : > { %v229_v33 = vadd.f32 %v228_v28, %v219_v25  ;;  %p732_p5 = por %p731_p3, %p730_p1 }
  0x38   : > { %v242_v34 = vadd.f32 %v241_v29, %v220_v26 }
  0x39   : > { %v230_v37 = vadd.f32 %v229_v33, %v221_v31  ;;  %p733_p6 = pnand %p732_p5, %p726_p0 }
  0x3a   : > { %383 = vperm.xlu1 %686, %v345_v17   ;;  %378 = vperm.xlu0 %685, %v344_v20   ;;  %v243_v38 = vadd.f32 %v242_v34, %v222_v32 }
  0x3b   : > { %v231_v41 = vadd.f32 %v230_v37, %v223_v35 }
  0x3c   : > { %v244_v42 = vadd.f32 %v243_v38, %v224_v36 }
  0x3d   : > { %v232_v43 = vrot.slane %v231_v41, 4 }
  0x3e   : > { %433 = vperm.xlu1 %686, %v419_v27   ;;  %428 = vperm.xlu0 %685, %v418_v30   ;;  %v245_v44 = vrot.slane %v244_v42, 4 }
  0x3f   : > { %v233_v47 = vadd.f32 %v232_v43, %v231_v41 }
  0x40   : > { %v246_v48 = vadd.f32 %v245_v44, %v244_v42 }
  0x41   : > { %v234_v49 = vrot.slane %v233_v47, 2 }
  0x42   : > { %443 = vperm.xlu1 %686, %v421_v39   ;;  %438 = vperm.xlu0 %685, %v420_v40   ;;  %v247_v50 = vrot.slane %v246_v48, 2 }
  0x43   : > { %v235_v53 = vadd.f32 %v234_v49, %v233_v47 }
  0x44   : > { %v248_v54 = vadd.f32 %v247_v50, %v246_v48 }
  0x45   : > { %v236_v55 = vrot.slane %v235_v53, 1 }
  0x46   : > { %453 = vperm.xlu1 %686, %v423_v45   ;;  %448 = vperm.xlu0 %685, %v422_v46   ;;  %v249_v56 = vrot.slane %v248_v54, 1 }
  0x47   : > { %v237_v57 = vadd.f32 %v236_v55, %v235_v53 }
  0x48   : > { %v250_v58 = vadd.f32 %v249_v56, %v248_v54 }
  0x49   : > { %v252_v59 = vmul.f32 0.015625, %v237_v57 }
  0x4a   : > { %463 = vperm.xlu1 %686, %v425_v51   ;;  %458 = vperm.xlu0 %685, %v424_v52   ;;  %v253_v60 = vmul.f32 0.015625, %v250_v58 }
  0x4b   : > { %v1017_v61 = vsub.f32 %v947_v7, %v252_v59  ;;  %v1023_v63 = vsub.f32 %v953_v9, %v252_v59  ;;  %v1029_v1 = vsub.f32 %v959_v11, %v252_v59  ;;  %v1035_v3 = vsub.f32 %v969_v15, %v252_v59 }
  0x4c   : > { %v1020_v62 = vsub.f32 %v950_v8, %v253_v60  ;;  %v1026_v0 = vsub.f32 %v956_v10, %v253_v60  ;;  %v1032_v2 = vsub.f32 %v962_v12, %v253_v60  ;;  %v1038_v4 = vsub.f32 %v972_v16, %v253_v60 }
  0x4d   : > { %v270_v5 = vmul.f32 %v1017_v61, %v1017_v61  ;;  %v272_v7 = vmul.f32 %v1023_v63, %v1023_v63  ;;  %v1048_v9 = vsub.f32 %v217_v21, %v252_v59  ;;  %v1050_v10 = vsub.f32 %v218_v22, %v253_v60 }
  0x4e   : > { %v271_v6 = vmul.f32 %v1020_v62, %v1020_v62  ;;  %v273_v8 = vmul.f32 %v1026_v0, %v1026_v0  ;;  %v274_v11 = vmul.f32 %v1029_v1, %v1029_v1  ;;  %v275_v12 = vmul.f32 %v1032_v2, %v1032_v2 }
  0x4f   : > { %v1056_v13 = vsub.f32 %v219_v25, %v252_v59  ;;  %v1058_v14 = vsub.f32 %v220_v26, %v253_v60  ;;  %v276_v15 = vmul.f32 %v1035_v3, %v1035_v3  ;;  %v277_v16 = vmul.f32 %v1038_v4, %v1038_v4 }
  0x50   : > { %v286_v17 = vadd.f32 %v272_v7, %v270_v5  ;;  %v299_v18 = vadd.f32 %v273_v8, %v271_v6  ;;  %v1064_v19 = vsub.f32 %v221_v31, %v252_v59  ;;  %v1066_v20 = vsub.f32 %v222_v32, %v253_v60 }
  0x51   : > { %v278_v21 = vmul.f32 %v1048_v9, %v1048_v9  ;;  %v279_v22 = vmul.f32 %v1050_v10, %v1050_v10  ;;  %v1072_v25 = vsub.f32 %v223_v35, %v252_v59  ;;  %v1074_v26 = vsub.f32 %v224_v36, %v253_v60 }
  0x52   : > { %v287_v23 = vadd.f32 %v286_v17, %v274_v11  ;;  %v300_v24 = vadd.f32 %v299_v18, %v275_v12  ;;  %v280_v27 = vmul.f32 %v1056_v13, %v1056_v13  ;;  %v281_v28 = vmul.f32 %v1058_v14, %v1058_v14 }
  0x53   : > { %v282_v31 = vmul.f32 %v1064_v19, %v1064_v19  ;;  %v283_v32 = vmul.f32 %v1066_v20, %v1066_v20  ;;  %v284_v35 = vmul.f32 %v1072_v25, %v1072_v25  ;;  %v285_v36 = vmul.f32 %v1074_v26, %v1074_v26 }
  0x54   : > { %v288_v29 = vadd.f32 %v287_v23, %v276_v15  ;;  %v301_v30 = vadd.f32 %v300_v24, %v277_v16 }
  0x56   : > { %v289_v33 = vadd.f32 %v288_v29, %v278_v21  ;;  %v302_v34 = vadd.f32 %v301_v30, %v279_v22 }
  0x58   : > { %v290_v37 = vadd.f32 %v289_v33, %v280_v27  ;;  %v303_v38 = vadd.f32 %v302_v34, %v281_v28 }
  0x5a   : > { %v291_v39 = vadd.f32 %v290_v37, %v282_v31  ;;  %v304_v40 = vadd.f32 %v303_v38, %v283_v32 }
  0x5c   : > { %v292_v41 = vadd.f32 %v291_v39, %v284_v35  ;;  %v305_v42 = vadd.f32 %v304_v40, %v285_v36 }
  0x5e   : > { %v293_v43 = vrot.slane %v292_v41, 4  ;;  %v306_v44 = vrot.slane %v305_v42, 4 }
  0x60   : > { %v294_v45 = vadd.f32 %v293_v43, %v292_v41  ;;  %v307_v46 = vadd.f32 %v306_v44, %v305_v42 }
  0x62   : > { %v295_v47 = vrot.slane %v294_v45, 2  ;;  %v308_v48 = vrot.slane %v307_v46, 2 }
  0x64   : > { %v296_v49 = vadd.f32 %v295_v47, %v294_v45  ;;  %v309_v50 = vadd.f32 %v308_v48, %v307_v46 }
  0x66   : > { %v297_v51 = vrot.slane %v296_v49, 1  ;;  %v310_v52 = vrot.slane %v309_v50, 1 }
  0x68   : > { %v298_v53 = vadd.f32 %v297_v51, %v296_v49  ;;  %v311_v54 = vadd.f32 %v310_v52, %v309_v50 }
  0x6a   : > { %v312_v55 = vmul.f32 0.015625, %v298_v53  ;;  %v313_v56 = vmul.f32 0.015625, %v311_v54 }
  0x6c   : > { %687 = vrsqrt.f32 %v312_v55  ;;  %vm316_vm0 = vcmp.eq.f32.partialorder %v312_v55, inf  ;;  %vm323_vm1 = vcmp.eq.f32.partialorder %v313_v56, inf  ;;  %v319_v5 = vand.u32 2147483648, %v312_v55 }
  0x6d   : > { %689 = vrsqrt.f32 %v313_v56  ;;  %vm318_vm2 = vcmp.eq.f32.partialorder %v312_v55, 0.0  ;;  %v326_v7 = vand.u32 2147483648, %v313_v56  ;;  %vm325_vm3 = vcmp.eq.f32.partialorder %v313_v56, 0.0 }
  0x79   : > { %v688_v57 = vpop.eup %687 }
  0x7a   : > { %v690_v58 = vpop.eup %689  ;;  %v315_v59 = vmul.f32 %v688_v57, %v312_v55 }
  0x7b   : > { %v322_v60 = vmul.f32 %v690_v58, %v313_v56 }
  0x7c   : > { %v317_v6 = vsel %vm316_vm0, %v312_v55, %v315_v59 }
  0x7d   : > { %v324_v8 = vsel %vm323_vm1, %v313_v56, %v322_v60  ;;  %v320_v11 = vsel %vm318_vm2, %v319_v5, %v317_v6 }
  0x7e   : > { %v327_v12 = vsel %vm325_vm3, %v326_v7, %v324_v8  ;;  %v328_v15 = vadd.f32 1e-05, %v320_v11 }
  0x7f   : > { %v329_v16 = vadd.f32 1e-05, %v327_v12 }
  0x80   : > { %691 = vrcp.f32 %v328_v15 }
  0x81   : > { %693 = vrcp.f32 %v329_v16 }
  0x8d   : > { %v692_v17 = vpop.eup %691 }
  0x8e   : > { %v694_v18 = vpop.eup %693  ;;  %v332_v21 = vmul.f32 %v692_v17, %v328_v15 }
  0x8f   : > { %v333_v22 = vmul.f32 %v694_v18, %v329_v16 }
  0x90   : > { %v334_v27 = vsub.f32 2.0, %v332_v21 }
  0x91   : > { %v335_v28 = vsub.f32 2.0, %v333_v22 }
  0x92   : > { %v336_v31 = vmul.f32 %v692_v17, %v334_v27 }
  0x93   : > { %v337_v32 = vmul.f32 %v694_v18, %v335_v28 }
  0xa9   : > { %v359_v23 = vpop.permute.xlu1 %358  ;;  %v349_v24 = vpop.permute.xlu0 %348 }
  0xaa   : > { %v386_v35 = vmul.f32 %v349_v24, %v336_v31  ;;  %v387_v36 = vmul.f32 %v349_v24, %v337_v32  ;;  %v390_v41 = vmul.f32 %v359_v23, %v336_v31  ;;  %v391_v42 = vmul.f32 %v359_v23, %v337_v32 }
  0xac   : > { %v402_v43 = vmul.f32 %v386_v35, %v1017_v61  ;;  %v403_v44 = vmul.f32 %v387_v36, %v1020_v62 }
  0xad   : > { %v364_v29 = vpop.permute.xlu1 %363  ;;  %v354_v30 = vpop.permute.xlu0 %353 }
  0xae   : > { %v388_v37 = vmul.f32 %v354_v30, %v336_v31  ;;  %v389_v38 = vmul.f32 %v354_v30, %v337_v32  ;;  %v392_v45 = vmul.f32 %v364_v29, %v336_v31  ;;  %v393_v46 = vmul.f32 %v364_v29, %v337_v32 }
  0xb0   : > { %v404_v47 = vmul.f32 %v388_v37, %v1023_v63  ;;  %v405_v48 = vmul.f32 %v389_v38, %v1026_v0  ;;  %v408_v61 = vmul.f32 %v392_v45, %v1035_v3  ;;  %v409_v62 = vmul.f32 %v393_v46, %v1038_v4 }
  0xb1   : > { %v374_v33 = vpop.permute.xlu1 %373  ;;  %v369_v34 = vpop.permute.xlu0 %368  ;;  %v406_v63 = vmul.f32 %v390_v41, %v1029_v1  ;;  %v407_v0 = vmul.f32 %v391_v42, %v1032_v2 }
  0xb2   : > { %v396_v55 = vmul.f32 %v374_v33, %v336_v31  ;;  %v397_v56 = vmul.f32 %v374_v33, %v337_v32  ;;  %v394_v57 = vmul.f32 %v369_v34, %v336_v31  ;;  %v395_v58 = vmul.f32 %v369_v34, %v337_v32 }
  0xb4   : > { %v412_v11 = vmul.f32 %v396_v55, %v1056_v13  ;;  %v413_v3 = vmul.f32 %v397_v56, %v1058_v14  ;;  %v410_v4 = vmul.f32 %v394_v57, %v1048_v9  ;;  %v411_v1 = vmul.f32 %v395_v58, %v1050_v10 }
  0xb5   : > { %v384_v39 = vpop.permute.xlu1 %383  ;;  %v379_v40 = vpop.permute.xlu0 %378 }
  0xb6   : > { %v400_v2 = vmul.f32 %v384_v39, %v336_v31  ;;  %v401_v12 = vmul.f32 %v384_v39, %v337_v32  ;;  %v398_v15 = vmul.f32 %v379_v40, %v336_v31  ;;  %v399_v16 = vmul.f32 %v379_v40, %v337_v32 }
  0xb8   : > { %v416_v10 = vmul.f32 %v400_v2, %v1072_v25  ;;  %v417_v22 = vmul.f32 %v401_v12, %v1074_v26  ;;  %v414_v23 = vmul.f32 %v398_v15, %v1064_v19  ;;  %v415_v24 = vmul.f32 %v399_v16, %v1066_v20 }
  0xb9   : > { %v434_v49 = vpop.permute.xlu1 %433  ;;  %v429_v50 = vpop.permute.xlu0 %428 }
  0xba   : > { %v468_v51 = vadd.f32 %v434_v49, %v404_v47  ;;  %v469_v52 = vadd.f32 %v434_v49, %v405_v48  ;;  %v466_v53 = vadd.f32 %v429_v50, %v402_v43  ;;  %v467_v54 = vadd.f32 %v429_v50, %v403_v44 }
  0xbc   : > { %484 = vst [vmem:[%s1094_s8 + $0x10] sm:$0xff] %v468_v51  ;;  %485 = vst [vmem:[%s1094_s8 + $0x18] sm:$0xff] %v469_v52 }
  0xbd   : > { %482 = vst [vmem:[%s1094_s8] sm:$0xff] %v466_v53  ;;  %483 = vst [vmem:[%s1094_s8 + $0x8] sm:$0xff] %v467_v54  ;;  %v444_v59 = vpop.permute.xlu1 %443  ;;  %v439_v60 = vpop.permute.xlu0 %438 }
  0xbe   : > { %v472_v5 = vadd.f32 %v444_v59, %v408_v61  ;;  %v473_v6 = vadd.f32 %v444_v59, %v409_v62  ;;  %v470_v7 = vadd.f32 %v439_v60, %v406_v63  ;;  %v471_v8 = vadd.f32 %v439_v60, %v407_v0 }
  0xc0   : > { %488 = vst [vmem:[%s1094_s8 + $0x30] sm:$0xff] %v472_v5  ;;  %489 = vst [vmem:[%s1094_s8 + $0x38] sm:$0xff] %v473_v6 }
  0xc1   : > { %486 = vst [vmem:[%s1094_s8 + $0x20] sm:$0xff] %v470_v7  ;;  %487 = vst [vmem:[%s1094_s8 + $0x28] sm:$0xff] %v471_v8  ;;  %v454_v13 = vpop.permute.xlu1 %453  ;;  %v449_v14 = vpop.permute.xlu0 %448 }
  0xc2   : > { %v476_v17 = vadd.f32 %v454_v13, %v412_v11  ;;  %v477_v9 = vadd.f32 %v454_v13, %v413_v3  ;;  %v474_v18 = vadd.f32 %v449_v14, %v410_v4  ;;  %v475_v21 = vadd.f32 %v449_v14, %v411_v1 }
  0xc4   : > { %492 = vst [vmem:[%s1094_s8 + $0x50] sm:$0xff] %v476_v17  ;;  %493 = vst [vmem:[%s1094_s8 + $0x58] sm:$0xff] %v477_v9 }
  0xc5   : > { %490 = vst [vmem:[%s1094_s8 + $0x40] sm:$0xff] %v474_v18  ;;  %491 = vst [vmem:[%s1094_s8 + $0x48] sm:$0xff] %v475_v21  ;;  %v464_v27 = vpop.permute.xlu1 %463  ;;  %v459_v28 = vpop.permute.xlu0 %458 }
  0xc6   : > { %v480_v25 = vadd.f32 %v464_v27, %v416_v10  ;;  %v481_v29 = vadd.f32 %v464_v27, %v417_v22  ;;  %v478_v26 = vadd.f32 %v459_v28, %v414_v23  ;;  %v479_v30 = vadd.f32 %v459_v28, %v415_v24 }
  0xc8   : > { %496 = vst [vmem:[%s1094_s8 + $0x70] sm:$0xff] %v480_v25  ;;  %497 = vst [vmem:[%s1094_s8 + $0x78] sm:$0xff] %v481_v29 }
  0xc9   : > { %494 = vst [vmem:[%s1094_s8 + $0x60] sm:$0xff] %v478_v26  ;;  %495 = vst [vmem:[%s1094_s8 + $0x68] sm:$0xff] %v479_v30 }
  0xca   : > { %736 = shalt.err (!%p733_p6)
}
  0xcb   : > { %s737_s22 = scalar_lea.hbm %s1125_s10, 2048  ;;  %s741_s5 = scalar_lea.hbm %s1182_s3, 4096 }
  0xcc   : > { %p738_p7 = scmp.ne.s32.totalorder %s1125_s10, %s737_s22  ;;  %p742_p13 = scmp.lt.s32.totalorder %s1125_s10, %s1182_s3 }
  0xcd   : > { %p743_p2 = scmp.lt.s32.totalorder %s741_s5, %s737_s22 }
  0xce   : > { %p739_p10 = pnand %p738_p7, %p883_p9 }
  0xcf   : > { %p744_p8 = por %p743_p2, %p742_p13 }
  0xd0   : > { %p740_p4 = pneg %p739_p10 }
  0xd2   : > { %p745_p12 = pnand %p744_p8, %p740_p4 }
  0xd4   : > { %748 = shalt.err (!%p745_p12)
}
  0xd5   : > { %s810_s8 = smov 256   ;;  %s811_s29 = smov 16  }
  0xd6   : > { %620 = dma.vmem_to_hbm [thread:$0]  (%p883_p9), %s1127_s24, 2048, %s1125_s10, %s499_s11, %s810_s8, %s810_s8, %s811_s29  }
  0xd7 PF: > { %s529_s15 = sand.u32 1, %s783_s12   ;;  %p1188_p0 = scmp.ge.s32.totalorder %s803_s17, 2 }
  0xd8   : > { %s530_s9 = scalar_lea.sflag [#allocation4], %s529_s15 }
  0xd9   : > { %p627_p1 = pnand %p1188_p0, %p890_p11 }
  0xdb   : > { %p628_p3 = pneg %p627_p1 }
  0xdd   : > { %778 = dma.done.wait (%p628_p3), %s530_s9, 2048  }
  0xde   : > { %780 = vsyncadd (%p628_p3), %s530_s9, 4294965248  ;;  %s19_s17 = sadd.s32 1, %s803_s17   ;;  %s1189_s12 = smov %s787_s13 }
  0xdf   : > { %p16_p5 = scmp.ge.s32.totalorder %s19_s17, 4   ;;  %s1190_s13 = smov %s791_s14 }
  0xe0   : > { %s1191_s14 = smov %s888_s26  ;;  %s1192_s15 = smov %s799_s16 }
  0xe1   : > { %s1193_s16 = smov %s1195_s20  ;;  %18 = sbr.rel (!%p16_p5) target bundleno = 6 (0x6), region = 77 }
  0xe6   :  { %535 = vsyncpa [#allocation3], 1 }
  0xe7   :  { %537 = vsyncpa [#allocation3 + $0x1], 1 }
  0xe8   :  { %538 = vsyncpa [#allocation4], 1 }
  0xe9   :  { %540 = vsyncpa [#allocation4 + $0x1], 1 }

</bundles_post_ra>
